<compile_context>
chip_gen: v5e
topology: v5e:2x2
jax: 0.10.0
libtpu: 0.0.40
codegen_flags: <defaults>
</compile_context>

<pallas_src>
import functools

import jax
import jax.numpy as jnp
from jax.experimental import pallas as pl
from jax.experimental.pallas import tpu as pltpu  # noqa: F401  (TPU backend)

EPS = 1e-5  # PyTorch BatchNorm2d default


def _shift_cols(v, d):
    """result[:, s] = v[:, s + d] for 0 <= s + d < S, zero-filled elsewhere."""
    if d == 0:
        return v
    rows, S = v.shape
    fill = jnp.zeros((rows, abs(d)), v.dtype)
    if d > 0:
        return jnp.concatenate([v[:, d:], fill], axis=1)
    return jnp.concatenate([fill, v[:, :S + d]], axis=1)


def _resblock_kernel(
    x_ref,       # (Cin, S)        channels-first, batch+spatial flat on lanes
    mask_ref,    # (k*k, S)        0/1 validity per conv tap ("same" zero pad)
    sel_ref,     # (S, Sh)         0/1 selection: even-x/even-y -> pooled index
    w0_ref,      # (nf0, Cin)      1x1 conv0, BN0 scale folded in
    sh0_ref,     # (nf0, 1)        folded BN0 shift
    w1_ref,      # (nf1, k*k*nf0)  kxk conv1 in im2col layout, BN1 scale folded
    sh1_ref,     # (nf1, 1)        folded BN1 shift
    wt_ref,      # (nf2, nf1+Cin)  fused tail: [sf0*w2 | sf1*ws]
    bt_ref,      # (nf2, 1)        fused tail bias: sf0*b2 + sf1*bs
    o_ref,       # (nf2, Sh)
    *, W, k, p,
):
    x = x_ref[...]                                          # (Cin, S)
    masks = mask_ref[...]                                   # (k*k, S)

    # ---- classifier: 1x1 conv (+folded BN) -> ReLU -------------------------
    y0 = jnp.dot(w0_ref[...], x, preferred_element_type=jnp.float32)
    y0 = jnp.maximum(y0 + sh0_ref[...], 0.0)                # (nf0, S)

    # ---- kxk "same" conv as ONE im2col matmul (K = k*k*nf0) ----------------
    pieces = []
    for dy in range(k):
        for dx in range(k):
            d = (dy - p) * W + (dx - p)
            t = dy * k + dx
            pieces.append(_shift_cols(y0, d) * masks[t:t + 1, :])
    patches = jnp.concatenate(pieces, axis=0)               # (k*k*nf0, S)
    y1 = jnp.dot(w1_ref[...], patches, preferred_element_type=jnp.float32)
    y1 = jnp.maximum(y1 + sh1_ref[...], 0.0)                # (nf1, S)

    # ---- 2x2 / stride-2 maxpool on both paths (shift + max) ----------------
    # Valid pooled values sit at columns with even x and even y; everything
    # else is discarded by the selection matmul below.
    def pool(v):
        m = jnp.maximum(v, _shift_cols(v, 1))
        return jnp.maximum(m, _shift_cols(m, W))

    u = jnp.concatenate([pool(y1), pool(x)], axis=0)        # (nf1+Cin, S)

    # Exact 0/1 selection matmul: compacts the pooled columns while staying
    # lane-dense and using the otherwise idle MXU.
    u_sel = jnp.dot(u, sel_ref[...], preferred_element_type=jnp.float32)  # (nf1+Cin, Sh)

    # ---- fused tail 1x1 convs + softmax(W) weighting -----------------------
    o_ref[...] = (jnp.dot(wt_ref[...], u_sel, preferred_element_type=jnp.float32)
                  + bt_ref[...])                            # (nf2, Sh)


def downsampling_resblock_pallas(x_nchw, params, num_filters, kernel_size):
    """Wrapper: NCHW in / NCHW out; kernel works channels-first, spatial-on-lanes."""
    N, Cin, H, W = x_nchw.shape
    nf0, nf1, nf2 = num_filters
    k = kernel_size[0]
    p = k // 2
    Hh, Wh = H // 2, W // 2
    S, Sh = N * H * W, N * Hh * Wh
    f32 = jnp.float32

    # channels-first, batch + spatial flattened on the lane axis
    x_cf = jnp.transpose(x_nchw, (1, 0, 2, 3)).reshape(Cin, S).astype(f32)

    # -- parameter plumbing (glue): fold BN scales & softmax(W) into weights --
    inv0 = params["g0"] / jnp.sqrt(params["v0"] + EPS)
    w0 = (params["w0"][:, :, 0, 0] * inv0[:, None]).astype(f32)           # (nf0, Cin)
    sh0 = (params["be0"] + (params["b0"] - params["m0"]) * inv0).reshape(nf0, 1).astype(f32)

    inv1 = params["g1"] / jnp.sqrt(params["v1"] + EPS)
    w1 = jnp.transpose(params["w1"], (0, 2, 3, 1)).reshape(nf1, k * k * nf0)
    w1 = (w1 * inv1[:, None]).astype(f32)                                 # (nf1, k*k*nf0)
    sh1 = (params["be1"] + (params["b1"] - params["m1"]) * inv1).reshape(nf1, 1).astype(f32)

    sf = jax.nn.softmax(params["W"].astype(f32))                          # (2,)
    w2 = params["w2"][:, :, 0, 0].astype(f32)                             # (nf2, nf1)
    ws = params["ws"][:, :, 0, 0].astype(f32)                             # (nf2, Cin)
    wt = jnp.concatenate([sf[0] * w2, sf[1] * ws], axis=1)                # (nf2, nf1+Cin)
    bt = (sf[0] * params["b2"] + sf[1] * params["bs"]).reshape(nf2, 1).astype(f32)

    # per-tap validity masks (implement the "same" zero padding of conv1)
    ss = jnp.arange(S, dtype=jnp.int32)
    col_x = ss % W
    col_y = (ss // W) % H
    mask_rows = []
    for dy in range(k):
        for dx in range(k):
            oy, ox = dy - p, dx - p
            ok = ((col_x + ox >= 0) & (col_x + ox < W)
                  & (col_y + oy >= 0) & (col_y + oy < H))
            mask_rows.append(ok.astype(f32))
    masks = jnp.stack(mask_rows, axis=0)                                  # (k*k, S)

    # 0/1 selection matrix: pooled output column j = (n, yh, xh) picks the
    # flattened input position (n, 2*yh, 2*xh)
    jj = jnp.arange(Sh, dtype=jnp.int32)
    n_j = jj // (Hh * Wh)
    r_j = jj % (Hh * Wh)
    yh_j = r_j // Wh
    xh_j = r_j % Wh
    src = n_j * H * W + (2 * yh_j) * W + 2 * xh_j
    sel = jnp.zeros((S, Sh), f32).at[src, jj].set(1.0)                    # (S, Sh)

    kernel = functools.partial(_resblock_kernel, W=W, k=k, p=p)

    # Single invocation (batch folded into the lane axis): no grid loop,
    # no per-step overhead; all operands live whole in VMEM (< 1 MiB total).
    out = pl.pallas_call(
        kernel,
        out_shape=jax.ShapeDtypeStruct((nf2, Sh), f32),
    )(x_cf, masks, sel, w0, sh0, w1, sh1, wt, bt)

    # (nf2, N*Hh*Wh) -> NCHW
    return jnp.transpose(out.reshape(nf2, N, Hh, Wh), (1, 0, 2, 3))


# ---------------------------- pure-JAX reference ----------------------------
def reference_nchw(x, params, num_filters, kernel_size):
    p = kernel_size[0] // 2

    def conv(x, w, b, pad):
        y = jax.lax.conv_general_dilated(
            x, w, (1, 1), pad, dimension_numbers=("NCHW", "OIHW", "NCHW"))
        return y + b[None, :, None, None]

    def bn(x, g, be, m, v):
        return ((x - m[None, :, None, None])
                / jnp.sqrt(v[None, :, None, None] + EPS)
                * g[None, :, None, None] + be[None, :, None, None])

    def maxpool(x):
        return jax.lax.reduce_window(x, -jnp.inf, jax.lax.max,
                                     (1, 1, 2, 2), (1, 1, 2, 2), "VALID")

    sf = jax.nn.softmax(params["W"])
    y = conv(x, params["w0"], params["b0"], "VALID")
    y = jnp.maximum(bn(y, params["g0"], params["be0"], params["m0"], params["v0"]), 0.0)
    y = conv(y, params["w1"], params["b1"], [(p, p), (p, p)])
    y = jnp.maximum(bn(y, params["g1"], params["be1"], params["m1"], params["v1"]), 0.0)
    y = maxpool(y)
    y = conv(y, params["w2"], params["b2"], "VALID")
    s = conv(maxpool(x), params["ws"], params["bs"], "VALID")
    return y * sf[0] + s * sf[1]


# ---------------------------------- main ------------------------------------
if __name__ == "__main__":
    N, Cin, H, W = 2, 4, 16, 16
    num_filters = (8, 8, 16)
    kernel_size = (3, 3)
    nf0, nf1, nf2 = num_filters
    k = kernel_size[0]

    key = jax.random.PRNGKey(0)
    ks = jax.random.split(key, 20)

    params = {
        # conv weights in PyTorch OIHW layout
        "w0": 0.2 * jax.random.normal(ks[0], (nf0, Cin, 1, 1), jnp.float32),
        "b0": 0.1 * jax.random.normal(ks[1], (nf0,), jnp.float32),
        "g0": 1.0 + 0.1 * jax.random.normal(ks[2], (nf0,), jnp.float32),
        "be0": 0.1 * jax.random.normal(ks[3], (nf0,), jnp.float32),
        "m0": 0.1 * jax.random.normal(ks[4], (nf0,), jnp.float32),
        "v0": jax.random.uniform(ks[5], (nf0,), jnp.float32, 0.5, 1.5),

        "w1": 0.2 * jax.random.normal(ks[6], (nf1, nf0, k, k), jnp.float32),
        "b1": 0.1 * jax.random.normal(ks[7], (nf1,), jnp.float32),
        "g1": 1.0 + 0.1 * jax.random.normal(ks[8], (nf1,), jnp.float32),
        "be1": 0.1 * jax.random.normal(ks[9], (nf1,), jnp.float32),
        "m1": 0.1 * jax.random.normal(ks[10], (nf1,), jnp.float32),
        "v1": jax.random.uniform(ks[11], (nf1,), jnp.float32, 0.5, 1.5),

        "w2": 0.2 * jax.random.normal(ks[12], (nf2, nf1, 1, 1), jnp.float32),
        "b2": 0.1 * jax.random.normal(ks[13], (nf2,), jnp.float32),

        "ws": 0.2 * jax.random.normal(ks[14], (nf2, Cin, 1, 1), jnp.float32),
        "bs": 0.1 * jax.random.normal(ks[15], (nf2,), jnp.float32),

        "W": jax.random.normal(ks[16], (2,), jnp.float32),
    }

    x = jax.random.normal(ks[17], (N, Cin, H, W), jnp.float32)

    out = downsampling_resblock_pallas(x, params, num_filters, kernel_size)
    out = jax.block_until_ready(out)

    ref = jax.block_until_ready(reference_nchw(x, params, num_filters, kernel_size))

    assert out.shape == (N, nf2, H // 2, W // 2), out.shape
    assert jnp.allclose(out, ref, atol=2e-4, rtol=2e-4), \
        f"max abs err {jnp.max(jnp.abs(out - ref))}"

    print("KERNEL_OK")
</pallas_src>

<mosaic_0001>
module attributes {stable_mosaic.version = 11 : i64} {
  func.func @_resblock_kernel(%arg0: memref<4x512xf32, #tpu.memory_space<vmem>>, %arg1: memref<9x512xf32, #tpu.memory_space<vmem>>, %arg2: memref<512x128xf32, #tpu.memory_space<vmem>>, %arg3: memref<8x4xf32, #tpu.memory_space<vmem>>, %arg4: memref<8x1xf32, #tpu.memory_space<vmem>>, %arg5: memref<8x72xf32, #tpu.memory_space<vmem>>, %arg6: memref<8x1xf32, #tpu.memory_space<vmem>>, %arg7: memref<16x12xf32, #tpu.memory_space<vmem>>, %arg8: memref<16x1xf32, #tpu.memory_space<vmem>>, %arg9: memref<16x128xf32, #tpu.memory_space<vmem>>) attributes {dimension_semantics = [], scalar_prefetch = 0 : i64, scratch_operands = 0 : i64, tpu.core_type = #tpu.core_type<tc>} {
    %c0 = arith.constant 0 : index
    %c0_0 = arith.constant 0 : index
    %0 = vector.load %arg0[%c0, %c0_0] : memref<4x512xf32, #tpu.memory_space<vmem>>, vector<4x512xf32>
    %c0_1 = arith.constant 0 : index
    %c0_2 = arith.constant 0 : index
    %1 = vector.load %arg1[%c0_1, %c0_2] : memref<9x512xf32, #tpu.memory_space<vmem>>, vector<9x512xf32>
    %c0_3 = arith.constant 0 : index
    %c0_4 = arith.constant 0 : index
    %2 = vector.load %arg3[%c0_3, %c0_4] : memref<8x4xf32, #tpu.memory_space<vmem>>, vector<8x4xf32>
    %cst = arith.constant dense<0.000000e+00> : vector<8x512xf32>
    %3 = tpu.matmul %2, %0, %cst {dimension_numbers = #tpu.dot_dimension_numbers<[1], [0], [0], [1], [0, 0, 1, 1], [], []>} : vector<8x4xf32>, vector<4x512xf32>, vector<8x512xf32> -> vector<8x512xf32>
    %c0_5 = arith.constant 0 : index
    %c0_6 = arith.constant 0 : index
    %4 = vector.load %arg4[%c0_5, %c0_6] : memref<8x1xf32, #tpu.memory_space<vmem>>, vector<8x1xf32>
    %5 = vector.broadcast %4 : vector<8x1xf32> to vector<8x512xf32>
    %6 = arith.addf %3, %5 : vector<8x512xf32>
    %cst_7 = arith.constant 0.000000e+00 : f32
    %7 = vector.broadcast %cst_7 : f32 to vector<8x512xf32>
    %8 = arith.maximumf %6, %7 : vector<8x512xf32>
    %cst_8 = arith.constant 0.000000e+00 : f32
    %9 = vector.broadcast %cst_8 : f32 to vector<8x17xf32>
    %10 = vector.extract_strided_slice %8 {offsets = [0, 0], sizes = [8, 495], strides = [1, 1]} : vector<8x512xf32> to vector<8x495xf32>
    %11 = tpu.concatenate %9, %10 in 1 : vector<8x17xf32>, vector<8x495xf32> -> vector<8x512xf32>
    %12 = vector.extract_strided_slice %1 {offsets = [0, 0], sizes = [1, 512], strides = [1, 1]} : vector<9x512xf32> to vector<1x512xf32>
    %13 = vector.broadcast %12 : vector<1x512xf32> to vector<8x512xf32>
    %14 = arith.mulf %11, %13 : vector<8x512xf32>
    %cst_9 = arith.constant 0.000000e+00 : f32
    %15 = vector.broadcast %cst_9 : f32 to vector<8x16xf32>
    %16 = vector.extract_strided_slice %8 {offsets = [0, 0], sizes = [8, 496], strides = [1, 1]} : vector<8x512xf32> to vector<8x496xf32>
    %17 = tpu.concatenate %15, %16 in 1 : vector<8x16xf32>, vector<8x496xf32> -> vector<8x512xf32>
    %18 = vector.extract_strided_slice %1 {offsets = [1, 0], sizes = [1, 512], strides = [1, 1]} : vector<9x512xf32> to vector<1x512xf32>
    %19 = vector.broadcast %18 : vector<1x512xf32> to vector<8x512xf32>
    %20 = arith.mulf %17, %19 : vector<8x512xf32>
    %cst_10 = arith.constant 0.000000e+00 : f32
    %21 = vector.broadcast %cst_10 : f32 to vector<8x15xf32>
    %22 = vector.extract_strided_slice %8 {offsets = [0, 0], sizes = [8, 497], strides = [1, 1]} : vector<8x512xf32> to vector<8x497xf32>
    %23 = tpu.concatenate %21, %22 in 1 : vector<8x15xf32>, vector<8x497xf32> -> vector<8x512xf32>
    %24 = vector.extract_strided_slice %1 {offsets = [2, 0], sizes = [1, 512], strides = [1, 1]} : vector<9x512xf32> to vector<1x512xf32>
    %25 = vector.broadcast %24 : vector<1x512xf32> to vector<8x512xf32>
    %26 = arith.mulf %23, %25 : vector<8x512xf32>
    %cst_11 = arith.constant 0.000000e+00 : f32
    %27 = vector.broadcast %cst_11 : f32 to vector<8x1xf32>
    %28 = vector.extract_strided_slice %8 {offsets = [0, 0], sizes = [8, 511], strides = [1, 1]} : vector<8x512xf32> to vector<8x511xf32>
    %29 = tpu.concatenate %27, %28 in 1 : vector<8x1xf32>, vector<8x511xf32> -> vector<8x512xf32>
    %30 = vector.extract_strided_slice %1 {offsets = [3, 0], sizes = [1, 512], strides = [1, 1]} : vector<9x512xf32> to vector<1x512xf32>
    %31 = vector.broadcast %30 : vector<1x512xf32> to vector<8x512xf32>
    %32 = arith.mulf %29, %31 : vector<8x512xf32>
    %33 = vector.extract_strided_slice %1 {offsets = [4, 0], sizes = [1, 512], strides = [1, 1]} : vector<9x512xf32> to vector<1x512xf32>
    %34 = vector.broadcast %33 : vector<1x512xf32> to vector<8x512xf32>
    %35 = arith.mulf %8, %34 : vector<8x512xf32>
    %cst_12 = arith.constant 0.000000e+00 : f32
    %36 = vector.broadcast %cst_12 : f32 to vector<8x1xf32>
    %37 = vector.extract_strided_slice %8 {offsets = [0, 1], sizes = [8, 511], strides = [1, 1]} : vector<8x512xf32> to vector<8x511xf32>
    %38 = tpu.concatenate %37, %36 in 1 : vector<8x511xf32>, vector<8x1xf32> -> vector<8x512xf32>
    %39 = vector.extract_strided_slice %1 {offsets = [5, 0], sizes = [1, 512], strides = [1, 1]} : vector<9x512xf32> to vector<1x512xf32>
    %40 = vector.broadcast %39 : vector<1x512xf32> to vector<8x512xf32>
    %41 = arith.mulf %38, %40 : vector<8x512xf32>
    %cst_13 = arith.constant 0.000000e+00 : f32
    %42 = vector.broadcast %cst_13 : f32 to vector<8x15xf32>
    %43 = vector.extract_strided_slice %8 {offsets = [0, 15], sizes = [8, 497], strides = [1, 1]} : vector<8x512xf32> to vector<8x497xf32>
    %44 = tpu.concatenate %43, %42 in 1 : vector<8x497xf32>, vector<8x15xf32> -> vector<8x512xf32>
    %45 = vector.extract_strided_slice %1 {offsets = [6, 0], sizes = [1, 512], strides = [1, 1]} : vector<9x512xf32> to vector<1x512xf32>
    %46 = vector.broadcast %45 : vector<1x512xf32> to vector<8x512xf32>
    %47 = arith.mulf %44, %46 : vector<8x512xf32>
    %cst_14 = arith.constant 0.000000e+00 : f32
    %48 = vector.broadcast %cst_14 : f32 to vector<8x16xf32>
    %49 = vector.extract_strided_slice %8 {offsets = [0, 16], sizes = [8, 496], strides = [1, 1]} : vector<8x512xf32> to vector<8x496xf32>
    %50 = tpu.concatenate %49, %48 in 1 : vector<8x496xf32>, vector<8x16xf32> -> vector<8x512xf32>
    %51 = vector.extract_strided_slice %1 {offsets = [7, 0], sizes = [1, 512], strides = [1, 1]} : vector<9x512xf32> to vector<1x512xf32>
    %52 = vector.broadcast %51 : vector<1x512xf32> to vector<8x512xf32>
    %53 = arith.mulf %50, %52 : vector<8x512xf32>
    %cst_15 = arith.constant 0.000000e+00 : f32
    %54 = vector.broadcast %cst_15 : f32 to vector<8x17xf32>
    %55 = vector.extract_strided_slice %8 {offsets = [0, 17], sizes = [8, 495], strides = [1, 1]} : vector<8x512xf32> to vector<8x495xf32>
    %56 = tpu.concatenate %55, %54 in 1 : vector<8x495xf32>, vector<8x17xf32> -> vector<8x512xf32>
    %57 = vector.extract_strided_slice %1 {offsets = [8, 0], sizes = [1, 512], strides = [1, 1]} : vector<9x512xf32> to vector<1x512xf32>
    %58 = vector.broadcast %57 : vector<1x512xf32> to vector<8x512xf32>
    %59 = arith.mulf %56, %58 : vector<8x512xf32>
    %60 = tpu.concatenate %14, %20, %26, %32, %35, %41, %47, %53, %59 in 0 : vector<8x512xf32>, vector<8x512xf32>, vector<8x512xf32>, vector<8x512xf32>, vector<8x512xf32>, vector<8x512xf32>, vector<8x512xf32>, vector<8x512xf32>, vector<8x512xf32> -> vector<72x512xf32>
    %c0_16 = arith.constant 0 : index
    %c0_17 = arith.constant 0 : index
    %61 = vector.load %arg5[%c0_16, %c0_17] : memref<8x72xf32, #tpu.memory_space<vmem>>, vector<8x72xf32>
    %cst_18 = arith.constant dense<0.000000e+00> : vector<8x512xf32>
    %62 = tpu.matmul %61, %60, %cst_18 {dimension_numbers = #tpu.dot_dimension_numbers<[1], [0], [0], [1], [0, 0, 1, 1], [], []>} : vector<8x72xf32>, vector<72x512xf32>, vector<8x512xf32> -> vector<8x512xf32>
    %c0_19 = arith.constant 0 : index
    %c0_20 = arith.constant 0 : index
    %63 = vector.load %arg6[%c0_19, %c0_20] : memref<8x1xf32, #tpu.memory_space<vmem>>, vector<8x1xf32>
    %64 = vector.broadcast %63 : vector<8x1xf32> to vector<8x512xf32>
    %65 = arith.addf %62, %64 : vector<8x512xf32>
    %cst_21 = arith.constant 0.000000e+00 : f32
    %66 = vector.broadcast %cst_21 : f32 to vector<8x512xf32>
    %67 = arith.maximumf %65, %66 : vector<8x512xf32>
    %cst_22 = arith.constant 0.000000e+00 : f32
    %68 = vector.broadcast %cst_22 : f32 to vector<8x1xf32>
    %69 = vector.extract_strided_slice %67 {offsets = [0, 1], sizes = [8, 511], strides = [1, 1]} : vector<8x512xf32> to vector<8x511xf32>
    %70 = tpu.concatenate %69, %68 in 1 : vector<8x511xf32>, vector<8x1xf32> -> vector<8x512xf32>
    %71 = arith.maximumf %67, %70 : vector<8x512xf32>
    %cst_23 = arith.constant 0.000000e+00 : f32
    %72 = vector.broadcast %cst_23 : f32 to vector<8x16xf32>
    %73 = vector.extract_strided_slice %71 {offsets = [0, 16], sizes = [8, 496], strides = [1, 1]} : vector<8x512xf32> to vector<8x496xf32>
    %74 = tpu.concatenate %73, %72 in 1 : vector<8x496xf32>, vector<8x16xf32> -> vector<8x512xf32>
    %75 = arith.maximumf %71, %74 : vector<8x512xf32>
    %cst_24 = arith.constant 0.000000e+00 : f32
    %76 = vector.broadcast %cst_24 : f32 to vector<4x1xf32>
    %77 = vector.extract_strided_slice %0 {offsets = [0, 1], sizes = [4, 511], strides = [1, 1]} : vector<4x512xf32> to vector<4x511xf32>
    %78 = tpu.concatenate %77, %76 in 1 : vector<4x511xf32>, vector<4x1xf32> -> vector<4x512xf32>
    %79 = arith.maximumf %0, %78 : vector<4x512xf32>
    %cst_25 = arith.constant 0.000000e+00 : f32
    %80 = vector.broadcast %cst_25 : f32 to vector<4x16xf32>
    %81 = vector.extract_strided_slice %79 {offsets = [0, 16], sizes = [4, 496], strides = [1, 1]} : vector<4x512xf32> to vector<4x496xf32>
    %82 = tpu.concatenate %81, %80 in 1 : vector<4x496xf32>, vector<4x16xf32> -> vector<4x512xf32>
    %83 = arith.maximumf %79, %82 : vector<4x512xf32>
    %84 = tpu.concatenate %75, %83 in 0 : vector<8x512xf32>, vector<4x512xf32> -> vector<12x512xf32>
    %c0_26 = arith.constant 0 : index
    %c0_27 = arith.constant 0 : index
    %85 = vector.load %arg2[%c0_26, %c0_27] : memref<512x128xf32, #tpu.memory_space<vmem>>, vector<512x128xf32>
    %cst_28 = arith.constant dense<0.000000e+00> : vector<12x128xf32>
    %86 = tpu.matmul %84, %85, %cst_28 {dimension_numbers = #tpu.dot_dimension_numbers<[1], [0], [0], [1], [0, 0, 1, 1], [], []>} : vector<12x512xf32>, vector<512x128xf32>, vector<12x128xf32> -> vector<12x128xf32>
    %c0_29 = arith.constant 0 : index
    %c0_30 = arith.constant 0 : index
    %87 = vector.load %arg7[%c0_29, %c0_30] : memref<16x12xf32, #tpu.memory_space<vmem>>, vector<16x12xf32>
    %cst_31 = arith.constant dense<0.000000e+00> : vector<16x128xf32>
    %88 = tpu.matmul %87, %86, %cst_31 {dimension_numbers = #tpu.dot_dimension_numbers<[1], [0], [0], [1], [0, 0, 1, 1], [], []>} : vector<16x12xf32>, vector<12x128xf32>, vector<16x128xf32> -> vector<16x128xf32>
    %c0_32 = arith.constant 0 : index
    %c0_33 = arith.constant 0 : index
    %89 = vector.load %arg8[%c0_32, %c0_33] : memref<16x1xf32, #tpu.memory_space<vmem>>, vector<16x1xf32>
    %90 = vector.broadcast %89 : vector<16x1xf32> to vector<16x128xf32>
    %91 = arith.addf %88, %90 : vector<16x128xf32>
    %c0_34 = arith.constant 0 : index
    %c0_35 = arith.constant 0 : index
    %92 = vector.load %arg9[%c0_34, %c0_35] : memref<16x128xf32, #tpu.memory_space<vmem>>, vector<16x128xf32>
    tpu.vector_store %arg9[%c0_34, %c0_35], %91 {strides = array<i32>} : memref<16x128xf32, #tpu.memory_space<vmem>>, vector<16x128xf32>,
    return
  }
}

</mosaic_0001>

<bundles_post_ra>
// kernel: tpu_custom_call.1
= control target key start
LH: loop header
LB: loop body
LE: loop exit
PB: predicated region body
PF: predicated region fallthrough
CT: control target
= control target key end

     0   :  { %14 = vsyncpa [#allocation3], 0  ;;  %s1370_s0 = inlined_call_operand.vmem [shape: f32[4,512], index: 0, kind: input, shape index: {}]   ;;  %s1371_s1 = inlined_call_operand.hbm [shape: f32[9,512], index: 1, kind: input, shape index: {}]   ;;  %s1372_s2 = inlined_call_operand.hbm [shape: f32[512,128], index: 2, kind: input, shape index: {}]   ;;  %s1373_s3 = inlined_call_operand.vmem [shape: f32[8,4], index: 3, kind: input, shape index: {}]   ;;  %s1374_s4 = inlined_call_operand.vmem [shape: f32[8,1], index: 4, kind: input, shape index: {}]   ;;  %s1375_s5 = inlined_call_operand.vmem [shape: f32[8,72], index: 5, kind: input, shape index: {}]   ;;  %s1376_s6 = inlined_call_operand.vmem [shape: f32[8,1], index: 6, kind: input, shape index: {}]   ;;  %s1377_s7 = inlined_call_operand.vmem [shape: f32[16,12], index: 7, kind: input, shape index: {}]   ;;  %s1378_s8 = inlined_call_operand.vmem [shape: f32[16,1], index: 8, kind: input, shape index: {}]   ;;  %s1379_s9 = inlined_call_operand.hbm [shape: f32[16,128], index: 9, kind: output, shape index: {}]  }
   0x1   :  { %15 = vsyncpa [#allocation6], 0 }
   0x2   :  { %16 = vsyncpa [#allocation4], 0  ;;  %s23_s11 = sshll.u32 %s1371_s1, 4  ;;  %s979_s12 = smov [#allocation2]   ;;  %s24_s11 = int_to_ptr.hbm [resolvable:$true] %s23_s11 }
   0x3   :  { %s25_s13 = sshll.u32 %s979_s12, 4  ;;  %s36_s16 = sshll.u32 %s1372_s2, 4  ;;  %s26_s13 = int_to_ptr.vmem [resolvable:$true] %s25_s13  ;;  %s37_s16 = int_to_ptr.hbm [resolvable:$true] %s36_s16 }
   0x4   :  { %s980_s17 = smov 512   ;;  %s981_s18 = smov 32  }
   0x5   :  { %31 = dma.hbm_to_vmem [thread:$0]  %s24_s11, 1024, %s26_s13, [#allocation3], %s980_s17, %s980_s17, %s981_s18  }
   0x6   :  { %s982_s19 = smov [#allocation5]   ;;  %s983_s21 = smov 128  }
   0x7   :  { %s38_s20 = sshll.u32 %s982_s19, 4  ;;  %s984_s22 = smov 8   ;;  %s39_s20 = int_to_ptr.vmem [resolvable:$true] %s38_s20 }
   0x8   :  { %44 = dma.hbm_to_vmem [thread:$0]  %s37_s16, 8192, %s39_s20, [#allocation6], %s983_s21, %s983_s21, %s984_s22  }
   0x9   :  { %973 = dma.done.wait [#allocation3], 1024  }
   0xa   :  { %974 = vsyncadd [#allocation3], 4294966272 }
   0xb   :  { %975 = dma.done.wait [#allocation6], 8192  }
   0xc   :  { %976 = vsyncadd [#allocation6], 4294959104  ;;  %v985_v0 = vmov 0   ;;  %v1057_v1 = vld [vmem:[%s1370_s0] sm:$0xff]  ;;  %v1062_v2 = vld [vmem:[%s1370_s0 + $0x8] sm:$0xff]  ;;  %vm95_vm0 = vcmask 1043456  }
   0xd   :  { %874 = vset.pattern.permute.xlu0 %v985_v0  ;;  %895 = vset.pattern.permute.xlu1 %v985_v0  ;;  %84 = vst [vmem:[#allocation1] ss:$2 sm:$0xff] %v1057_v1  ;;  %v76_v3 = vld [vmem:[%s1374_s4] sm:$0xff]  ;;  %vm91_vm1 = vcmask 31744   ;;  %s986_s0 = smov 15   ;;  %s988_s4 = smov 1  }
   0xe   :  { %896 = vset.pattern.permute.xlu2 %v985_v0  ;;  %86 = vst [vmem:[#allocation1 + $0x10] ss:$2 sm:$0xff] %v1062_v2  ;;  %79 = vperm.xlu0 %874, %v76_v3   ;;  %v75_v4 = vld [vmem:[%s1373_s3] sm:$0xff]  ;;  %s987_s3 = smov 111   ;;  %s989_s29 = smov 16   ;;  %vm383_vm2 = vcmask 908288  }
   0xf   :  { %s990_s30 = smov 112   ;;  %s991_s10 = smov 113   ;;  %v401_v22 = vld [vmem:[%s1376_s6] sm:$0xff]  ;;  %v897_v29 = vld [vmem:[#allocation2 + $0x20] ss:$0 sm:$0xff]  ;;  %vm358_vm3 = vcmask 916480  }
  0x10   :  { %s992_s11 = smov 127   ;;  %s993_s12 = smov 17   ;;  %v1156_v35 = vld [vmem:[#allocation2] sm:$0xff]  ;;  %vm333_vm4 = vcmask 924672   ;;  %v898_v48 = vld [vmem:[#allocation2 + $0x38] ss:$0 sm:$0xff] }
  0x11   :  { %v367_v36 = vperm.slane %v1156_v35, 7  ;;  %v342_v40 = vperm.slane %v1156_v35, 6  ;;  %v317_v49 = vperm.slane %v1156_v35, 5  ;;  %v1172_v50 = vld [vmem:[#allocation2 + $0x18] sm:$0xff]  ;;  %vm308_vm5 = vcmask 1039360   ;;  %s994_s2 = smov [#allocation7]  }
  0x12   :  { %v370_v53 = vperm.slane %v1172_v50, 7  ;;  %v292_v57 = vperm.slane %v1156_v35, 4  ;;  %v899_v0 = vld [vmem:[#allocation2 + $0x28] ss:$0 sm:$0xff]  ;;  %v900_v3 = vld [vmem:[#allocation2 + $0x30] ss:$0 sm:$0xff] }
  0x13   :  { %vm275_vm6 = vcmask 7168   ;;  %vm250_vm7 = vcmask 121856   ;;  %vm225_vm8 = vcmask 130048   ;;  %vm200_vm9 = vcmask 138240   ;;  %s825_s23 = sshll.u32 %s994_s2, 4  ;;  %s827_s26 = sshll.u32 %s1379_s9, 4  ;;  %s826_s23 = int_to_ptr.vmem [resolvable:$true] %s825_s23  ;;  %s828_s26 = int_to_ptr.hbm [resolvable:$true] %s827_s26 }
  0x14   :  { %v87_v5 = vld.sshfl [vmem:[#allocation1] sm:$0xff pattern:$0x75316420]  ;;  %v88_v6 = vld.sshfl [vmem:[#allocation1 + $0x8] sm:$0xff pattern:$0x75316420] }
  0x15   :  { %841 = vmatpush.msk.msra.mxu0 %vm95_vm0, %v87_v5  ;;  %843 = vmatpush.msk.msra.mxu1 %vm95_vm0, %v88_v6  ;;  %543 = vst [vmem:[#allocation1] ss:$2 sm:$0xff] %v1057_v1  ;;  %v89_v7 = vld.sshfl [vmem:[#allocation1 + $0x10] sm:$0xff pattern:$0x75316420]  ;;  %vm407_vm10 = vcmask 588800  }
  0x16   :  { %845 = vmatpush.msk.msra.mxu2 %vm95_vm0, %v89_v7  ;;  %v90_v8 = vld.sshfl [vmem:[#allocation1 + $0x18] sm:$0xff pattern:$0x75316420]  ;;  %842 = vmatmul.msk.f32.vlgmr.msra.gmra.mxu0 %vm91_vm1, %v75_v4  ;;  %v1186_v6 = vld [vmem:[#allocation2 + $0x8] sm:$0xff]  ;;  %vm786_vm11 = vcmask 97280  }
  0x17   :  { %847 = vmatpush.msk.msra.mxu3 %vm95_vm0, %v90_v8  ;;  %545 = vst [vmem:[#allocation1 + $0x10] ss:$2 sm:$0xff] %v1062_v2  ;;  %844 = vmatmul.msk.f32.vlgmr.msra.gmra.mxu1 %vm91_vm1, %v75_v4  ;;  %v1188_v7 = vld [vmem:[#allocation2 + $0x10] sm:$0xff] }
  0x18   :  { %846 = vmatmul.msk.f32.vlgmr.msra.gmra.mxu2 %vm91_vm1, %v75_v4  ;;  %848 = vmatmul.msk.f32.vlgmr.msra.gmra.mxu3 %vm91_vm1, %v75_v4 }
  0x1e   :  { %v549_v60 = vld.sshfl [vmem:[#allocation1 + $0x18] sm:$0xff pattern:$0x75316420] }
  0x80   :  { %v80_v9 = vpop.permute.xlu0 %79 }
  0x93   :  { %v121_v13 = vpop.f32.mrf.mxu0 }
  0x94   :  { %v141_v10 = vpop.f32.mrf.mxu1  ;;  %v122_v14 = vadd.f32 %v121_v13, %v80_v9 }
  0x95   :  { %v142_v11 = vadd.f32 %v141_v10, %v80_v9  ;;  %v369_v10 = vperm.slane %v1188_v7, 7 }
  0x96   :  { %v1086_v15 = vmax.f32 %v122_v14, 0.0 }
  0x97   :  { %v1078_v12 = vmax.f32 %v142_v11, 0.0 }
  0x98   :  { %v296_v63 = vmul.f32 %v292_v57, %v1086_v15 }
  0x99   :  { %244 = vrot.lane.b32.xlu2 %v1078_v12, %s986_s0  ;;  %377 = vrot.lane.b32.xlu1 %v1078_v12, %s987_s3 }
  0x9a   :  { %269 = vrot.lane.b32.xlu0 %v1078_v12, %s988_s4 }
  0x9b   :  { %v181_v16 = vpop.f32.mrf.mxu3  ;;  %v161_v19 = vpop.f32.mrf.mxu2 }
  0x9c   :  { %v182_v17 = vadd.f32 %v181_v16, %v80_v9  ;;  %v162_v20 = vadd.f32 %v161_v19, %v80_v9  ;;  %v368_v9 = vperm.slane %v1186_v6, 7  ;;  %v547_v16 = vld.sshfl [vmem:[#allocation1 + $0x8] sm:$0xff pattern:$0x75316420] }
  0x9e   :  { %v1098_v18 = vmax.f32 %v182_v17, 0.0  ;;  %v1105_v21 = vmax.f32 %v162_v20, 0.0  ;;  %v343_v20 = vperm.slane %v1186_v6, 6 }
  0xa1   :  { %219 = vrot.lane.b32.xlu1 %v1078_v12, %s989_s29  ;;  %350 = vrot.lane.b32.xlu2 %v1086_v15, %s990_s30 }
  0xa2   :  { %375 = vrot.lane.b32.xlu0 %v1086_v15, %s987_s3 }
  0xa9   :  { %325 = vrot.lane.b32.xlu1 %v1086_v15, %s991_s10  ;;  %327 = vrot.lane.b32.xlu2 %v1078_v12, %s991_s10 }
  0xaa   :  { %352 = vrot.lane.b32.xlu0 %v1078_v12, %s990_s30 }
  0xb1   :  { %302 = vrot.lane.b32.xlu1 %v1078_v12, %s992_s11  ;;  %356 = vrot.lane.b32.xlu2 %v1098_v18, %s990_s30 }
  0xb2   :  { %194 = vrot.lane.b32.xlu0 %v1078_v12, %s993_s12 }
  0xb9   :  { %381 = vrot.lane.b32.xlu1 %v1098_v18, %s987_s3  ;;  %329 = vrot.lane.b32.xlu2 %v1105_v21, %s991_s10 }
  0xba   :  { %300 = vrot.lane.b32.xlu0 %v1086_v15, %s992_s11 }
  0xc1   :  { %354 = vrot.lane.b32.xlu1 %v1105_v21, %s990_s30  ;;  %306 = vrot.lane.b32.xlu2 %v1098_v18, %s992_s11 }
  0xc2   :  { %379 = vrot.lane.b32.xlu0 %v1105_v21, %s987_s3 }
  0xc9   :  { %304 = vrot.lane.b32.xlu1 %v1105_v21, %s992_s11  ;;  %273 = vrot.lane.b32.xlu2 %v1098_v18, %s988_s4 }
  0xca   :  { %331 = vrot.lane.b32.xlu0 %v1098_v18, %s991_s10 }
  0xd1   :  { %271 = vrot.lane.b32.xlu1 %v1105_v21, %s988_s4  ;;  %221 = vrot.lane.b32.xlu2 %v1105_v21, %s989_s29 }
  0xd2   :  { %246 = vrot.lane.b32.xlu0 %v1105_v21, %s986_s0 }
  0xd9   :  { %248 = vrot.lane.b32.xlu1 %v1098_v18, %s986_s0  ;;  %198 = vrot.lane.b32.xlu2 %v1098_v18, %s993_s12 }
  0xda   :  { %223 = vrot.lane.b32.xlu0 %v1098_v18, %s989_s29 }
  0xe1   :  { %196 = vrot.lane.b32.xlu1 %v1105_v21, %s993_s12  ;;  %267 = vrot.lane.b32.xlu2 %v1086_v15, %s988_s4 }
  0xe2   :  { %242 = vrot.lane.b32.xlu0 %v1086_v15, %s986_s0 }
  0xe9   :  { %217 = vrot.lane.b32.xlu1 %v1086_v15, %s989_s29  ;;  %192 = vrot.lane.b32.xlu2 %v1086_v15, %s993_s12 }
  0xea   :  { %404 = vperm.xlu0 %874, %v401_v22  }
  0xf1   :  { %556 = vrot.lane.b32.xlu1 %v549_v60, %s992_s11 }
  0xf2   :  { %552 = vrot.lane.b32.xlu0 %v547_v16, %s992_s11 }
  0xf3   :  { %v1145_v23 = vpop.permute.xlu2 %244 }
  0xfb   :  { %v351_v24 = vpop.permute.xlu2 %350 }
 0x103   :  { %v1147_v25 = vpop.permute.xlu2 %327 }
 0x10b   :  { %v378_v26 = vpop.permute.xlu1 %377  ;;  %v357_v27 = vpop.permute.xlu2 %356 }
 0x10c   :  { %v1149_v28 = vpop.permute.xlu0 %269  ;;  %v366_v54 = vsel %vm358_vm3, %v357_v27, 0.0 }
 0x10d   :  { %v374_v62 = vmul.f32 %v370_v53, %v366_v54  ;;  %v285_v53 = vperm.slane %v1186_v6, 3 }
 0x113   :  { %v1151_v30 = vpop.permute.xlu1 %219  ;;  %v1153_v31 = vpop.permute.xlu2 %329 }
 0x114   :  { %v376_v32 = vpop.permute.xlu0 %375  ;;  %v335_v22 = vsel %vm333_vm4, %v1147_v25, %v1153_v31 }
 0x115   :  { %v384_v33 = vsel %vm383_vm2, %v376_v32, %v378_v26  ;;  %v546_v32 = vld.sshfl [vmem:[#allocation1] sm:$0xff pattern:$0x75316420] }
 0x116   :  { %v396_v34 = vmul.f32 %v897_v29, %v384_v33  ;;  %v347_v33 = vmul.f32 %v343_v20, %v335_v22  ;;  %550 = vrot.lane.b32.xlu1 %v546_v32, %s992_s11  ;;  %v237_v20 = vperm.slane %v1172_v50, 1  ;;  %v211_v32 = vperm.slane %v1188_v7, 0 }
 0x118   :  { %418 = vmatpush.msrb.mxu0 %v396_v34  ;;  %v344_v34 = vperm.slane %v1188_v7, 6 }
 0x11b   :  { %v326_v37 = vpop.permute.xlu1 %325  ;;  %v1159_v38 = vpop.permute.xlu2 %306 }
 0x11c   :  { %v353_v39 = vpop.permute.xlu0 %352  ;;  %v334_v41 = vsel %vm333_vm4, %v326_v37, %v1147_v25  ;;  %v293_v37 = vperm.slane %v1186_v6, 4  ;;  %v316_v25 = vsel %vm308_vm5, %v1159_v38, 0.0 }
 0x11d   :  { %v359_v42 = vsel %vm358_vm3, %v351_v24, %v353_v39  ;;  %v346_v44 = vmul.f32 %v342_v40, %v334_v41  ;;  %v319_v41 = vperm.slane %v1188_v7, 5 }
 0x11e   :  { %v371_v43 = vmul.f32 %v367_v36, %v359_v42  ;;  %v345_v36 = vperm.slane %v1172_v50, 6  ;;  %v320_v42 = vperm.slane %v1172_v50, 5  ;;  %v297_v60 = vmul.f32 %v293_v37, %v1078_v12 }
 0x120   :  { %419 = vmatpush.msrb.mxu0 %v371_v43  ;;  %v294_v43 = vperm.slane %v1188_v7, 4 }
 0x122   :  { %420 = vmatpush.msrb.mxu0 %v346_v44 }
 0x123   :  { %v1165_v45 = vpop.permute.xlu1 %302  ;;  %v1167_v46 = vpop.permute.xlu2 %273 }
 0x124   :  { %v1169_v47 = vpop.permute.xlu0 %194 }
 0x12b   :  { %v382_v51 = vpop.permute.xlu1 %381  ;;  %v1174_v52 = vpop.permute.xlu2 %221 }
 0x12c   :  { %v391_v55 = vsel %vm383_vm2, %v382_v51, 0.0  ;;  %v301_v56 = vpop.permute.xlu0 %300  ;;  %v227_v16 = vsel %vm225_vm8, %v1151_v30, %v1174_v52 }
 0x12d   :  { %v309_v58 = vsel %vm308_vm5, %v301_v56, %v1165_v45  ;;  %v399_v59 = vmul.f32 %v898_v48, %v391_v55 }
 0x12e   :  { %v321_v61 = vmul.f32 %v317_v49, %v309_v58 }
 0x12f   :  { %478 = vmatpush.msrb.mxu3 %v399_v59 }
 0x130   :  { %421 = vmatpush.msrb.mxu0 %v321_v61 }
 0x131   :  { %479 = vmatpush.msrb.mxu3 %v374_v62  ;;  %v324_v62 = vmul.f32 %v320_v42, %v316_v25 }
 0x132   :  { %422 = vmatpush.msrb.mxu0 %v296_v63  ;;  %v286_v63 = vperm.slane %v1188_v7, 3 }
 0x133   :  { %v355_v4 = vpop.permute.xlu1 %354  ;;  %v1184_v5 = vpop.permute.xlu2 %198 }
 0x134   :  { %v380_v8 = vpop.permute.xlu0 %379  ;;  %v360_v11 = vsel %vm358_vm3, %v353_v39, %v355_v4  ;;  %v361_v13 = vsel %vm358_vm3, %v355_v4, %v357_v27  ;;  %v318_v27 = vperm.slane %v1186_v6, 5 }
 0x135   :  { %v385_v14 = vsel %vm383_vm2, %v378_v26, %v380_v8  ;;  %v386_v15 = vsel %vm383_vm2, %v380_v8, %v382_v51  ;;  %v372_v24 = vmul.f32 %v368_v9, %v360_v11  ;;  %v373_v29 = vmul.f32 %v369_v10, %v361_v13  ;;  %v548_v8 = vld.sshfl [vmem:[#allocation1 + $0x10] sm:$0xff pattern:$0x75316420] }
 0x136   :  { %v397_v17 = vmul.f32 %v899_v0, %v385_v14  ;;  %v398_v19 = vmul.f32 %v900_v3, %v386_v15  ;;  %v284_v26 = vperm.slane %v1156_v35, 3  ;;  %v287_v0 = vperm.slane %v1172_v50, 3  ;;  %554 = vrot.lane.b32.xlu2 %v548_v8, %s992_s11 }
 0x137   :  { %v298_v3 = vmul.f32 %v294_v43, %v1105_v21  ;;  %v261_v9 = vperm.slane %v1188_v7, 2  ;;  %v236_v15 = vperm.slane %v1188_v7, 1 }
 0x138   :  { %438 = vmatpush.msrb.mxu1 %v397_v17  ;;  %458 = vmatpush.msrb.mxu2 %v398_v19 }
 0x139   :  { %v240_v17 = vmul.f32 %v236_v15, %v227_v16 }
 0x13a   :  { %439 = vmatpush.msrb.mxu1 %v372_v24  ;;  %459 = vmatpush.msrb.mxu2 %v373_v29 }
 0x13b   :  { %v305_v39 = vpop.permute.xlu1 %304  ;;  %v268_v40 = vpop.permute.xlu2 %267 }
 0x13c   :  { %v310_v44 = vsel %vm308_vm5, %v1165_v45, %v305_v39  ;;  %v311_v48 = vsel %vm308_vm5, %v305_v39, %v1159_v38  ;;  %v283_v49 = vsel %vm275_vm6, 0.0, %v268_v40  ;;  %440 = vmatpush.msrb.mxu1 %v347_v33  ;;  %v332_v51 = vpop.permute.xlu0 %331  ;;  %v276_v58 = vsel %vm275_vm6, %v268_v40, %v1149_v28 }
 0x13d   :  { %v336_v54 = vsel %vm333_vm4, %v1153_v31, %v332_v51  ;;  %v341_v55 = vsel %vm333_vm4, %v332_v51, 0.0  ;;  %v288_v56 = vmul.f32 %v284_v26, %v283_v49  ;;  %v322_v57 = vmul.f32 %v318_v27, %v310_v44  ;;  %v400_v44 = vld [vmem:[%s1375_s5] sm:$0xff] }
 0x13e   :  { %v348_v45 = vmul.f32 %v344_v34, %v336_v54  ;;  %v349_v59 = vmul.f32 %v345_v36, %v341_v55  ;;  %v295_v38 = vperm.slane %v1172_v50, 4  ;;  %v323_v61 = vmul.f32 %v319_v41, %v311_v48 }
 0x13f   :  { %423 = vmatpush.msrb.mxu0 %v288_v56  ;;  %441 = vmatpush.msrb.mxu1 %v322_v57  ;;  %v289_v31 = vmul.f32 %v285_v53, %v276_v58  ;;  %v212_v33 = vperm.slane %v1172_v50, 0  ;;  %v259_v34 = vperm.slane %v1156_v35, 2  ;;  %v260_v36 = vperm.slane %v1186_v6, 2 }
 0x140   :  { %460 = vmatpush.msrb.mxu2 %v348_v45  ;;  %480 = vmatpush.msrb.mxu3 %v349_v59  ;;  %v299_v4 = vmul.f32 %v295_v38, %v1098_v18  ;;  %v235_v48 = vperm.slane %v1186_v6, 1  ;;  %v209_v51 = vperm.slane %v1156_v35, 0  ;;  %v210_v53 = vperm.slane %v1186_v6, 0 }
 0x141   :  { %442 = vmatpush.msrb.mxu1 %v297_v60 }
 0x142   :  { %461 = vmatpush.msrb.mxu2 %v323_v61  ;;  %481 = vmatpush.msrb.mxu3 %v324_v62 }
 0x143   :  { %v272_v12 = vpop.permute.xlu1 %271  ;;  %443 = vmatpush.msrb.mxu1 %v289_v31 }
 0x144   :  { %v277_v10 = vsel %vm275_vm6, %v1149_v28, %v272_v12  ;;  %v278_v11 = vsel %vm275_vm6, %v272_v12, %v1167_v46  ;;  %462 = vmatpush.msrb.mxu2 %v298_v3  ;;  %482 = vmatpush.msrb.mxu3 %v299_v4  ;;  %v247_v21 = vpop.permute.xlu0 %246  ;;  %v262_v46 = vperm.slane %v1172_v50, 2 }
 0x145   :  { %v252_v18 = vsel %vm250_vm7, %v1145_v23, %v247_v21  ;;  %v290_v13 = vmul.f32 %v286_v63, %v277_v10  ;;  %v291_v14 = vmul.f32 %v287_v0, %v278_v11 }
 0x146   :  { %v265_v28 = vmul.f32 %v261_v9, %v252_v18 }
 0x147   :  { %463 = vmatpush.msrb.mxu2 %v290_v13  ;;  %483 = vmatpush.msrb.mxu3 %v291_v14 }
 0x149   :  { %464 = vmatpush.msrb.mxu2 %v265_v28 }
 0x14b   :  { %v249_v19 = vpop.permute.xlu1 %248  ;;  %465 = vmatpush.msrb.mxu2 %v240_v17 }
 0x14c   :  { %v253_v22 = vsel %vm250_vm7, %v247_v21, %v249_v19  ;;  %v224_v24 = vpop.permute.xlu0 %223 }
 0x14d   :  { %v228_v29 = vsel %vm225_vm8, %v1174_v52, %v224_v24  ;;  %v266_v26 = vmul.f32 %v262_v46, %v253_v22 }
 0x14e   :  { %v241_v27 = vmul.f32 %v237_v20, %v228_v29 }
 0x14f   :  { %484 = vmatpush.msrb.mxu3 %v266_v26 }
 0x151   :  { %485 = vmatpush.msrb.mxu3 %v241_v27 }
 0x153   :  { %v197_v37 = vpop.permute.xlu1 %196 }
 0x154   :  { %v202_v25 = vsel %vm200_vm9, %v1169_v47, %v197_v37  ;;  %v203_v52 = vsel %vm200_vm9, %v197_v37, %v1184_v5  ;;  %v243_v39 = vpop.permute.xlu0 %242  ;;  %v193_v5 = vpop.permute.xlu2 %192 }
 0x155   :  { %v251_v40 = vsel %vm250_vm7, %v243_v39, %v1145_v23  ;;  %v258_v7 = vsel %vm250_vm7, 0.0, %v243_v39  ;;  %v215_v41 = vmul.f32 %v211_v32, %v202_v25  ;;  %v216_v50 = vmul.f32 %v212_v33, %v203_v52  ;;  %v663_v25 = vld [vmem:[#allocation5 + $0x178] sm:$0xff]  ;;  %v662_v39 = vld [vmem:[#allocation5 + $0x170] sm:$0xff] }
 0x156   :  { %v263_v42 = vmul.f32 %v259_v34, %v258_v7  ;;  %v264_v43 = vmul.f32 %v260_v36, %v251_v40  ;;  %v234_v23 = vperm.slane %v1156_v35, 1  ;;  %v201_v54 = vsel %vm200_vm9, %v193_v5, %v1169_v47  ;;  %v679_v52 = vld [vmem:[#allocation5 + $0x1f8] sm:$0xff] }
 0x157   :  { %466 = vmatpush.msrb.mxu2 %v215_v41  ;;  %486 = vmatpush.msrb.mxu3 %v216_v50  ;;  %v208_v55 = vsel %vm200_vm9, 0.0, %v193_v5  ;;  %v214_v38 = vmul.f32 %v210_v53, %v201_v54  ;;  %v678_v41 = vld [vmem:[#allocation5 + $0x1f0] sm:$0xff]  ;;  %v661_v50 = vld [vmem:[#allocation5 + $0x168] sm:$0xff]  ;;  %v660_v5 = vld [vmem:[#allocation5 + $0x160] sm:$0xff] }
 0x158   :  { %424 = vmatpush.msrb.mxu0 %v263_v42  ;;  %444 = vmatpush.msrb.mxu1 %v264_v43  ;;  %v213_v59 = vmul.f32 %v209_v51, %v208_v55  ;;  %v659_v53 = vld [vmem:[#allocation5 + $0x158] sm:$0xff] }
 0x159   :  { %851 = vmatmul.msk.f32.vlgmr.msrb.gmra.mxu2 %vm407_vm10, %v400_v44  ;;  %852 = vmatmul.msk.f32.vlgmr.msrb.gmra.mxu3 %vm407_vm10, %v400_v44  ;;  %v675_v55 = vld [vmem:[#allocation5 + $0x1d8] sm:$0xff] }
 0x15a   :  { %726 = vmatpush.msra.mxu2 %v663_v25  ;;  %749 = vmatpush.msra.mxu3 %v679_v52  ;;  %v643_v25 = vld [vmem:[#allocation5 + $0xd8] sm:$0xff]  ;;  %v626_v52 = vld [vmem:[#allocation5 + $0x50] sm:$0xff] }
 0x15b   :  { %v218_v49 = vpop.permute.xlu1 %217 }
 0x15c   :  { %v226_v56 = vsel %vm225_vm8, %v218_v49, %v1151_v30  ;;  %v233_v57 = vsel %vm225_vm8, 0.0, %v218_v49  ;;  %v405_v47 = vpop.permute.xlu0 %404  ;;  %727 = vmatpush.msra.mxu2 %v662_v39  ;;  %750 = vmatpush.msra.mxu3 %v678_v41  ;;  %v676_v49 = vld [vmem:[#allocation5 + $0x1e0] sm:$0xff]  ;;  %v642_v39 = vld [vmem:[#allocation5 + $0xd0] sm:$0xff]  ;;  %v625_v41 = vld [vmem:[#allocation5 + $0x48] sm:$0xff] }
 0x15d   :  { %v238_v58 = vmul.f32 %v234_v23, %v233_v57  ;;  %v239_v45 = vmul.f32 %v235_v48, %v226_v56 }
 0x15e   :  { %728 = vmatpush.msra.mxu2 %v661_v50  ;;  %v641_v50 = vld [vmem:[#allocation5 + $0xc8] sm:$0xff] }
 0x15f   :  { %425 = vmatpush.msrb.mxu0 %v238_v58  ;;  %445 = vmatpush.msrb.mxu1 %v239_v45  ;;  %v658_v58 = vld [vmem:[#allocation5 + $0x150] sm:$0xff] }
 0x160   :  { %729 = vmatpush.msra.mxu2 %v660_v5  ;;  %v674_v45 = vld [vmem:[#allocation5 + $0x1d0] sm:$0xff]  ;;  %v639_v5 = vld [vmem:[#allocation5 + $0xb8] sm:$0xff] }
 0x161   :  { %426 = vmatpush.msrb.mxu0 %v213_v59  ;;  %446 = vmatpush.msrb.mxu1 %v214_v38  ;;  %v657_v59 = vld [vmem:[#allocation5 + $0x148] sm:$0xff] }
 0x162   :  { %849 = vmatmul.msk.f32.vlgmr.msrb.gmra.mxu0 %vm407_vm10, %v400_v44  ;;  %850 = vmatmul.msk.f32.vlgmr.msrb.gmra.mxu1 %vm407_vm10, %v400_v44  ;;  %v677_v44 = vld [vmem:[#allocation5 + $0x1e8] sm:$0xff] }
 0x163   :  { %v557_v6 = vpop.permute.xlu1 %556  ;;  %751 = vmatpush.msra.mxu3 %v677_v44  ;;  %730 = vmatpush.msra.mxu2 %v659_v53  ;;  %v623_v44 = vld [vmem:[#allocation5 + $0x38] sm:$0xff]  ;;  %v620_v53 = vld [vmem:[#allocation5 + $0x20] sm:$0xff] }
 0x164   :  { %v562_v60 = vsel %vm308_vm5, %v557_v6, 0.0  ;;  %v553_v63 = vpop.permute.xlu0 %552 }
 0x165   :  { %v565_v61 = vrot.slane %v562_v60, 4  ;;  %752 = vmatpush.msra.mxu3 %v676_v49  ;;  %731 = vmatpush.msra.mxu2 %v658_v58  ;;  %v672_v60 = vld [vmem:[#allocation5 + $0x1c0] sm:$0xff]  ;;  %v621_v49 = vld [vmem:[#allocation5 + $0x28] sm:$0xff]  ;;  %v634_v58 = vld [vmem:[#allocation5 + $0x90] sm:$0xff] }
 0x167   :  { %753 = vmatpush.msra.mxu3 %v675_v55  ;;  %732 = vmatpush.msra.mxu2 %v657_v59  ;;  %v619_v55 = vld [vmem:[#allocation5 + $0x18] sm:$0xff]  ;;  %v633_v59 = vld [vmem:[#allocation5 + $0x88] sm:$0xff] }
 0x169   :  { %754 = vmatpush.msra.mxu3 %v674_v45  ;;  %v617_v45 = vld [vmem:[#allocation5 + $0x8] sm:$0xff] }
 0x188   :  { %v551_v4 = vpop.permute.xlu1 %550 }
 0x189   :  { %v558_v8 = vsel %vm308_vm5, %v551_v4, %v553_v63  ;;  %v653_v4 = vld [vmem:[#allocation5 + $0x128] sm:$0xff] }
 0x190   :  { %v555_v35 = vpop.permute.xlu2 %554 }
 0x191   :  { %v560_v30 = vsel %vm308_vm5, %v555_v35, %v557_v6  ;;  %v559_v0 = vsel %vm308_vm5, %v553_v63, %v555_v35  ;;  %v673_v35 = vld [vmem:[#allocation5 + $0x1c8] sm:$0xff] }
 0x192   :  { %v567_v62 = vsel %vm95_vm0, %v560_v30, %v565_v61  ;;  %v564_v3 = vrot.slane %v559_v0, 4  ;;  %755 = vmatpush.msra.mxu3 %v673_v35  ;;  %v655_v61 = vld [vmem:[#allocation5 + $0x138] sm:$0xff]  ;;  %v654_v0 = vld [vmem:[#allocation5 + $0x130] sm:$0xff]  ;;  %v632_v35 = vld [vmem:[#allocation5 + $0x80] sm:$0xff] }
 0x193   :  { %v1278_v31 = vmax.f32 %v1062_v2, %v567_v62 }
 0x194   :  { %v566_v9 = vsel %vm95_vm0, %v558_v8, %v564_v3  ;;  %756 = vmatpush.msra.mxu3 %v672_v60  ;;  %v670_v3 = vld [vmem:[#allocation5 + $0x1b0] sm:$0xff]  ;;  %v669_v8 = vld [vmem:[#allocation5 + $0x1a8] sm:$0xff] }
 0x195   :  { %576 = vst [vmem:[#allocation1 + $0x10] ss:$2 sm:$0xff] %v1278_v31  ;;  %v1286_v10 = vmax.f32 %v1057_v1, %v566_v9  ;;  %v668_v9 = vld [vmem:[#allocation5 + $0x1a0] sm:$0xff] }
 0x197   :  { %574 = vst [vmem:[#allocation1] ss:$2 sm:$0xff] %v1286_v10 }
 0x19c   :  { %v580_v12 = vld.sshfl [vmem:[#allocation1 + $0x18] sm:$0xff pattern:$0x75316420]  ;;  %v579_v24 = vld.sshfl [vmem:[#allocation1 + $0x10] sm:$0xff pattern:$0x75316420] }
 0x19d   :  { %587 = vrot.lane.b32.xlu1 %v580_v12, %s990_s30  ;;  %v652_v12 = vld [vmem:[#allocation5 + $0x120] sm:$0xff] }
 0x19e   :  { %v578_v2 = vld.sshfl [vmem:[#allocation1 + $0x8] sm:$0xff pattern:$0x75316420]  ;;  %v577_v29 = vld.sshfl [vmem:[#allocation1] sm:$0xff pattern:$0x75316420] }
 0x1a5   :  { %583 = vrot.lane.b32.xlu1 %v578_v2, %s990_s30  ;;  %v651_v2 = vld [vmem:[#allocation5 + $0x118] sm:$0xff] }
 0x1dc   :  { %v468_v11 = vpop.f32.mrf.mxu2  ;;  %v488_v21 = vpop.f32.mrf.mxu3 }
 0x1dd   :  { %v469_v18 = vadd.f32 %v468_v11, %v405_v47  ;;  %v489_v13 = vadd.f32 %v488_v21, %v405_v47  ;;  %v667_v11 = vld [vmem:[#allocation5 + $0x198] sm:$0xff] }
 0x1df   :  { %v493_v14 = vmax.f32 %v469_v18, 0.0  ;;  %v494_v15 = vmax.f32 %v489_v13, 0.0  ;;  %v428_v16 = vpop.f32.mrf.mxu0  ;;  %v448_v28 = vpop.f32.mrf.mxu1 }
 0x1e0   :  { %v1290_v17 = vadd.f32 %v428_v16, %v405_v47  ;;  %v1292_v46 = vadd.f32 %v448_v28, %v405_v47  ;;  %v656_v47 = vld [vmem:[#allocation5 + $0x140] sm:$0xff] }
 0x1e1   :  { %v875_v19 = vpack.i.bf16 %v494_v15, %v493_v14  ;;  %733 = vmatpush.msra.mxu2 %v656_v47 }
 0x1e2   :  { %v491_v1 = vmax.f32 %v1290_v17, 0.0  ;;  %v492_v20 = vmax.f32 %v1292_v46, 0.0  ;;  %v665_v17 = vld [vmem:[#allocation5 + $0x188] sm:$0xff]  ;;  %v630_v46 = vld [vmem:[#allocation5 + $0x70] sm:$0xff] }
 0x1e3   :  { %876 = vrot.lane.b32.xlu2 %v875_v19, %s992_s11  ;;  %734 = vmatpush.msra.mxu2 %v655_v61  ;;  %v650_v19 = vld [vmem:[#allocation5 + $0x110] sm:$0xff] }
 0x1e4   :  { %v880_v22 = vpack.i.bf16 %v492_v20, %v491_v1 }
 0x1e5   :  { %735 = vmatpush.msra.mxu2 %v654_v0 }
 0x1e6   :  { %881 = vrot.lane.b32.xlu0 %v880_v22, %s992_s11  ;;  %v666_v22 = vld [vmem:[#allocation5 + $0x190] sm:$0xff] }
 0x1e7   :  { %736 = vmatpush.msra.mxu2 %v653_v4 }
 0x1e9   :  { %737 = vmatpush.msra.mxu2 %v652_v12 }
 0x1eb   :  { %585 = vrot.lane.b32.xlu2 %v579_v24, %s990_s30  ;;  %738 = vmatpush.msra.mxu2 %v651_v2  ;;  %v631_v24 = vld [vmem:[#allocation5 + $0x78] sm:$0xff] }
 0x1ec   :  { %680 = vmatpush.msra.mxu0 %v631_v24 }
 0x1ed   :  { %739 = vmatpush.msra.mxu2 %v650_v19 }
 0x1ee   :  { %681 = vmatpush.msra.mxu0 %v630_v46 }
 0x1f3   :  { %581 = vrot.lane.b32.xlu2 %v577_v29, %s990_s30  ;;  %v647_v29 = vld [vmem:[#allocation5 + $0xf8] sm:$0xff] }
 0x1f4   :  { %703 = vmatpush.msra.mxu1 %v647_v29 }
 0x20f   :  { %v588_v26 = vpop.permute.xlu1 %587 }
 0x210   :  { %v593_v37 = vsel %vm358_vm3, %v588_v26, 0.0 }
 0x211   :  { %v596_v42 = vrot.slane %v593_v37, 4  ;;  %v627_v37 = vld [vmem:[#allocation5 + $0x58] sm:$0xff] }
 0x217   :  { %v584_v48 = vpop.permute.xlu1 %583 }
 0x23d   :  { %v1304_v27 = vpop.permute.xlu2 %876 }
 0x23e   :  { %v879_v32 = vunpack.i.h.bf16 %v1304_v27  ;;  %v878_v33 = vunpack.i.l.bf16 %v1304_v27  ;;  %v664_v27 = vld [vmem:[#allocation5 + $0x180] sm:$0xff] }
 0x240   :  { %v514_v34 = vsel %vm308_vm5, %v879_v32, 0.0  ;;  %v509_v36 = vsel %vm308_vm5, %v878_v33, %v879_v32  ;;  %v629_v32 = vld [vmem:[#allocation5 + $0x68] sm:$0xff] }
 0x241   :  { %v1313_v40 = vmax.f32 %v494_v15, %v514_v34  ;;  %v1315_v7 = vmax.f32 %v493_v14, %v509_v36  ;;  %v628_v34 = vld [vmem:[#allocation5 + $0x60] sm:$0xff]  ;;  %682 = vmatpush.msra.mxu0 %v629_v32 }
 0x242   :  { %v644_v36 = vld [vmem:[#allocation5 + $0xe0] sm:$0xff] }
 0x243   :  { %v885_v43 = vpack.i.bf16 %v1313_v40, %v1315_v7  ;;  %683 = vmatpush.msra.mxu0 %v628_v34 }
 0x245   :  { %v586_v23 = vpop.permute.xlu2 %585  ;;  %886 = vrot.lane.b32.xlu0 %v885_v43, %s990_s30  ;;  %684 = vmatpush.msra.mxu0 %v627_v37  ;;  %v640_v43 = vld [vmem:[#allocation5 + $0xc0] sm:$0xff] }
 0x246   :  { %v591_v51 = vsel %vm358_vm3, %v586_v23, %v588_v26  ;;  %v590_v57 = vsel %vm358_vm3, %v584_v48, %v586_v23  ;;  %v649_v26 = vld [vmem:[#allocation5 + $0x108] sm:$0xff]  ;;  %v622_v23 = vld [vmem:[#allocation5 + $0x30] sm:$0xff] }
 0x247   :  { %v598_v54 = vsel %vm95_vm0, %v591_v51, %v596_v42  ;;  %v595_v38 = vrot.slane %v590_v57, 4  ;;  %740 = vmatpush.msra.mxu2 %v649_v26  ;;  %685 = vmatpush.msra.mxu0 %v626_v52  ;;  %v624_v42 = vld [vmem:[#allocation5 + $0x40] sm:$0xff]  ;;  %v637_v51 = vld [vmem:[#allocation5 + $0xa8] sm:$0xff]  ;;  %v618_v57 = vld [vmem:[#allocation5 + $0x10] sm:$0xff] }
 0x248   :  { %v602_v56 = vmax.f32 %v1278_v31, %v598_v54  ;;  %v671_v31 = vld [vmem:[#allocation5 + $0x1b8] sm:$0xff]  ;;  %v636_v54 = vld [vmem:[#allocation5 + $0xa0] sm:$0xff] }
 0x249   :  { %757 = vmatpush.msra.mxu3 %v671_v31  ;;  %686 = vmatpush.msra.mxu0 %v625_v41 }
 0x24a   :  { %607 = vst [vmem:[#allocation1 + $0x10] ss:$2 sm:$0xff] %v602_v56  ;;  %v635_v56 = vld [vmem:[#allocation5 + $0x98] sm:$0xff] }
 0x24b   :  { %758 = vmatpush.msra.mxu3 %v670_v3  ;;  %687 = vmatpush.msra.mxu0 %v624_v42 }
 0x24d   :  { %v582_v6 = vpop.permute.xlu2 %581  ;;  %759 = vmatpush.msra.mxu3 %v669_v8  ;;  %688 = vmatpush.msra.mxu0 %v623_v44 }
 0x24e   :  { %v589_v30 = vsel %vm358_vm3, %v582_v6, %v584_v48  ;;  %v638_v48 = vld [vmem:[#allocation5 + $0xb0] sm:$0xff] }
 0x24f   :  { %v597_v62 = vsel %vm95_vm0, %v589_v30, %v595_v38  ;;  %760 = vmatpush.msra.mxu3 %v668_v9  ;;  %689 = vmatpush.msra.mxu0 %v622_v23  ;;  %v616_v38 = vld [vmem:[#allocation5] sm:$0xff] }
 0x250   :  { %v601_v63 = vmax.f32 %v1286_v10, %v597_v62 }
 0x251   :  { %761 = vmatpush.msra.mxu3 %v667_v11  ;;  %690 = vmatpush.msra.mxu0 %v621_v49  ;;  %v611_v0 = vld.sshfl [vmem:[#allocation1 + $0x18] sm:$0xff pattern:$0x75316420] }
 0x252   :  { %605 = vst [vmem:[#allocation1] ss:$2 sm:$0xff] %v601_v63  ;;  %v610_v63 = vld.sshfl [vmem:[#allocation1 + $0x10] sm:$0xff pattern:$0x75316420] }
 0x253   :  { %762 = vmatpush.msra.mxu3 %v666_v22  ;;  %691 = vmatpush.msra.mxu0 %v620_v53 }
 0x255   :  { %763 = vmatpush.msra.mxu3 %v665_v17  ;;  %692 = vmatpush.msra.mxu0 %v619_v55 }
 0x257   :  { %764 = vmatpush.msra.mxu3 %v664_v27  ;;  %693 = vmatpush.msra.mxu0 %v618_v57  ;;  %v773_v27 = vld [vmem:[%s1377_s7 + $0x8] sm:$0xff] }
 0x258   :  { %v882_v21 = vpop.permute.xlu0 %881 }
 0x259   :  { %v884_v10 = vunpack.i.h.bf16 %v882_v21  ;;  %v883_v18 = vunpack.i.l.bf16 %v882_v21  ;;  %694 = vmatpush.msra.mxu0 %v617_v45  ;;  %v774_v21 = vld [vmem:[%s1378_s8] sm:$0xff] }
 0x25a   :  { %778 = vperm.xlu1 %895, %v774_v21  }
 0x25b   :  { %v508_v13 = vsel %vm308_vm5, %v884_v10, %v878_v33  ;;  %v507_v14 = vsel %vm308_vm5, %v883_v18, %v884_v10  ;;  %v645_v33 = vld [vmem:[#allocation5 + $0xe8] sm:$0xff]  ;;  %695 = vmatpush.msra.mxu0 %v616_v38  ;;  %v775_v10 = vld [vmem:[%s1378_s8 + $0x8] sm:$0xff] }
 0x25c   :  { %v1333_v15 = vmax.f32 %v491_v1, %v507_v14  ;;  %v1337_v16 = vmax.f32 %v492_v20, %v508_v13  ;;  %v646_v1 = vld [vmem:[#allocation5 + $0xf0] sm:$0xff]  ;;  %v648_v20 = vld [vmem:[#allocation5 + $0x100] sm:$0xff]  ;;  %783 = vperm.xlu2 %896, %v775_v10  }
 0x25d   :  { %704 = vmatpush.msra.mxu1 %v646_v1  ;;  %741 = vmatpush.msra.mxu2 %v648_v20  ;;  %v772_v20 = vld [vmem:[%s1377_s7] sm:$0xff] }
 0x25e   :  { %v890_v28 = vpack.i.bf16 %v1337_v16, %v1333_v15 }
 0x25f   :  { %705 = vmatpush.msra.mxu1 %v645_v33 }
 0x260   :  { %891 = vrot.lane.b32.xlu0 %v890_v28, %s990_s30 }
 0x261   :  { %706 = vmatpush.msra.mxu1 %v644_v36 }
 0x263   :  { %707 = vmatpush.msra.mxu1 %v643_v25 }
 0x265   :  { %708 = vmatpush.msra.mxu1 %v642_v39 }
 0x267   :  { %709 = vmatpush.msra.mxu1 %v641_v50 }
 0x269   :  { %710 = vmatpush.msra.mxu1 %v640_v43 }
 0x26b   :  { %711 = vmatpush.msra.mxu1 %v639_v5 }
 0x26d   :  { %712 = vmatpush.msra.mxu1 %v638_v48 }
 0x26f   :  { %713 = vmatpush.msra.mxu1 %v637_v51 }
 0x271   :  { %714 = vmatpush.msra.mxu1 %v636_v54 }
 0x273   :  { %715 = vmatpush.msra.mxu1 %v635_v56 }
 0x275   :  { %716 = vmatpush.msra.mxu1 %v634_v58 }
 0x277   :  { %717 = vmatpush.msra.mxu1 %v633_v59 }
 0x279   :  { %718 = vmatpush.msra.mxu1 %v632_v35 }
 0x2b6   :  { %v784_v33 = vpop.permute.xlu2 %783 }
 0x2b7   :  { %v887_v47 = vpop.permute.xlu0 %886 }
 0x2b8   :  { %v889_v6 = vunpack.i.h.bf16 %v887_v47  ;;  %v888_v60 = vunpack.i.l.bf16 %v887_v47 }
 0x2ba   :  { %v538_v30 = vsel %vm358_vm3, %v889_v6, 0.0  ;;  %v533_v61 = vsel %vm358_vm3, %v888_v60, %v889_v6 }
 0x2bb   :  { %v542_v62 = vmax.f32 %v1313_v40, %v538_v30  ;;  %v541_v31 = vmax.f32 %v1315_v7, %v533_v61  ;;  %v608_v40 = vld.sshfl [vmem:[#allocation1] sm:$0xff pattern:$0x75316420]  ;;  %v609_v7 = vld.sshfl [vmem:[#allocation1 + $0x8] sm:$0xff pattern:$0x75316420] }
 0x2bd   :  { %742 = vmatmul.f32.vlgmr.msra.gmra.mxu2 %v541_v31  ;;  %765 = vmatmul.f32.vlgmr.msra.gmra.mxu3 %v542_v62 }
 0x2c5   :  { %745 = vmatmul.f32.gmra.mxu2 %v610_v63  ;;  %768 = vmatmul.f32.gmra.mxu3 %v611_v0 }
 0x2cc   :  { %v779_v32 = vpop.permute.xlu1 %778 }
 0x2d2   :  { %v892_v3 = vpop.permute.xlu0 %891 }
 0x2d3   :  { %v894_v4 = vunpack.i.h.bf16 %v892_v3  ;;  %v893_v8 = vunpack.i.l.bf16 %v892_v3 }
 0x2d5   :  { %v532_v12 = vsel %vm358_vm3, %v894_v4, %v888_v60  ;;  %v531_v9 = vsel %vm358_vm3, %v893_v8, %v894_v4 }
 0x2d6   :  { %v540_v2 = vmax.f32 %v1337_v16, %v532_v12  ;;  %v539_v11 = vmax.f32 %v1333_v15, %v531_v9 }
 0x2d8   :  { %696 = vmatmul.f32.vlgmr.msra.gmra.mxu0 %v539_v11  ;;  %719 = vmatmul.f32.vlgmr.msra.gmra.mxu1 %v540_v2 }
 0x2e0   :  { %699 = vmatmul.f32.gmra.mxu0 %v608_v40  ;;  %722 = vmatmul.f32.gmra.mxu1 %v609_v7 }
 0x340   :  { %v743_v18 = vpop.f32.mrf.mxu2  ;;  %v766_v15 = vpop.f32.mrf.mxu3 }
 0x348   :  { %v746_v24 = vpop.f32.mrf.mxu2  ;;  %v769_v17 = vpop.f32.mrf.mxu3 }
 0x355   :  { %v697_v13 = vpop.f32.mrf.mxu0  ;;  %v720_v14 = vpop.f32.mrf.mxu1 }
 0x356   :  { %v721_v16 = vadd.f32 %v720_v14, %v697_v13 }
 0x358   :  { %v744_v29 = vadd.f32 %v743_v18, %v721_v16 }
 0x35a   :  { %v767_v1 = vadd.f32 %v766_v15, %v744_v29 }
 0x35d   :  { %v700_v28 = vpop.f32.mrf.mxu0  ;;  %v723_v19 = vpop.f32.mrf.mxu1 }
 0x35e   :  { %v724_v22 = vadd.f32 %v723_v19, %v700_v28 }
 0x360   :  { %v747_v26 = vadd.f32 %v746_v24, %v724_v22 }
 0x362   :  { %v770_v46 = vadd.f32 %v769_v17, %v747_v26 }
 0x364   :  { %853 = vmatpush.msk.msrb.mxu0 %vm95_vm0, %v770_v46  ;;  %856 = vmatpush.msk.msrb.mxu1 %vm95_vm0, %v770_v46 }
 0x366   :  { %811 = vmatpush.msrb.mxu0 %v767_v1  ;;  %857 = vmatpush.msrb.mxu1 %v767_v1 }
 0x367   :  { %854 = vmatmul.msk.f32.vlgmr.msrb.gmra.mxu0 %vm786_vm11, %v772_v20  ;;  %855 = vmatmul.msk.f32.vlgmr.msrb.gmra.mxu1 %vm786_vm11, %v773_v27 }
 0x3e4   :  { %v813_v34 = vpop.f32.mrf.mxu0  ;;  %v816_v36 = vpop.f32.mrf.mxu1 }
 0x3e5   :  { %v814_v37 = vadd.f32 %v813_v34, %v779_v32  ;;  %v817_v25 = vadd.f32 %v816_v36, %v784_v33 }
 0x3e7   :  { %819 = vst [vmem:[#allocation7] sm:$0xff] %v814_v37 }
 0x3e8   :  { %820 = vst [vmem:[#allocation7 + $0x8] sm:$0xff] %v817_v25 }
 0x3e9   :  { %833 = dma.vmem_to_hbm [thread:$0]  %s826_s23, 256, %s828_s26, [#allocation4], %s983_s21, %s983_s21, %s984_s22  }
 0x3ea   :  { %977 = dma.done.wait [#allocation4], 256  }
 0x3eb   :  { %978 = vsyncadd [#allocation4], 4294967040 }
 0x3ec   :  { %838 = vsyncpa [#allocation3], 1 }
 0x3ed   :  { %839 = vsyncpa [#allocation6], 1 }
 0x3ee   :  { %840 = vsyncpa [#allocation4], 1 }

</bundles_post_ra>
